<compile_context>
chip_gen: v5e
topology: v5e:2x2
jax: 0.10.0
libtpu: 0.0.40
codegen_flags: <defaults>
</compile_context>

<pallas_src>
from functools import partial

import numpy as np
import jax
import jax.numpy as jnp
from jax.experimental import pallas as pl
from jax.experimental.pallas import tpu as pltpu

HIDDEN = 32
NUM_HEADS = 8
HEAD_DIM = HIDDEN // NUM_HEADS
N_NODES = 16
N_EDGES = 32
N_GRAPHS = 2


def physics_attention_kernel(
    x_ref, w_ref, add_ref, oh_ref, sum_ref, out_ref,
    *, hidden, head_dim, n_edges,
):
    f32 = jnp.float32
    x = x_ref[...]                                                   # [N, H*D]
    w = w_ref[...]                                                   # [H*D, 4*H*D]
    addend = add_ref[...]                                            # [N, 4*H*D]

    # One fused MXU push for Wq|Wk|Wv|Wo; biases + per-node field embedding
    # (physics bias on K) are pre-folded into `addend`.  Lanes [3H:4H) of
    # `proj` (x @ Wo) are unused filler.
    proj = jnp.dot(x, w, preferred_element_type=f32) + addend        # [N, 4*H*D]
    q = proj[:, :hidden]                                             # [N, H*D]
    kv = proj[:, hidden:3 * hidden]                                  # [N, 2*H*D]

    # Edge gathers via one-hot matmuls; dst-side K and V gathered together.
    oh = oh_ref[...]                                                 # [2E, N]
    src_oh = oh[:n_edges, :]                                         # [E, N]
    dst_oh = oh[n_edges:, :]                                         # [E, N]
    qe = jnp.dot(src_oh, q, preferred_element_type=f32)              # [E, H*D]
    keve = jnp.dot(dst_oh, kv, preferred_element_type=f32)           # [E, 2*H*D]
    ke = keve[:, :hidden]
    ve = keve[:, hidden:]

    # Per-edge, per-head scores: sum over head_dim via block-diag matmul.
    sum_mat = sum_ref[...]                                           # [H*D, H]
    scores = jnp.dot(qe * ke, sum_mat, preferred_element_type=f32)   # [E, H]
    scores = scores * (1.0 / float(np.sqrt(head_dim)))

    # Softmax over the edge dimension (dim=0), per head — as in the module.
    m = jnp.max(scores, axis=0, keepdims=True)
    p = jnp.exp(scores - m)
    inv_denom = pl.reciprocal(jnp.sum(p, axis=0, keepdims=True), approx=False)
    attn = p * inv_denom                                             # [E, H]

    # Broadcast attention per head over head_dim and weight the values.
    attn_exp = jax.lax.dot_general(
        attn, sum_mat,
        dimension_numbers=(((1,), (1,)), ((), ())),
        preferred_element_type=f32,
    )                                                                # [E, H*D]
    attended = attn_exp * ve                                         # [E, H*D]

    # Scatter-add back to source nodes: contract the edge axis of src_oh
    # directly (no transposed one-hot input needed).
    out_nodes = jax.lax.dot_general(
        src_oh, attended,
        dimension_numbers=(((0,), (0,)), ((), ())),
        preferred_element_type=f32,
    )                                                                # [N, H*D]

    # Output projection (Wo = last H*D lanes of the weight slab, bo = last
    # H*D lanes of any addend row) + residual.
    wo = w[:, 3 * hidden:]                                           # [H*D, H*D]
    bo = addend[0:1, 3 * hidden:]                                    # [1, H*D]
    out = jnp.dot(out_nodes, wo, preferred_element_type=f32) + bo
    out_ref[...] = x + out


def physics_aware_attention(x, params, edge_index, edge_attr, field_vector, batch):
    # edge_attr and the symmetry_embedding parameter are unused in the reference
    # forward pass; kept in the signature for parity.
    # TODO(synk): symmetry_embedding (nn.Embedding(230, hidden)) is defined in
    # __init__ but never used in forward, so it is intentionally not materialized.
    del edge_attr
    n, hidden = x.shape
    e = edge_index.shape[1]

    src = edge_index[0]
    dst = edge_index[1]

    # --- host-side glue (plain JAX) -------------------------------------
    # One-hot gather/scatter matrices, packed into a single slab.
    src_oh = jax.nn.one_hot(src, n, dtype=jnp.float32)               # [E, N]
    dst_oh = jax.nn.one_hot(dst, n, dtype=jnp.float32)               # [E, N]
    oh_slab = jnp.concatenate([src_oh, dst_oh], axis=0)              # [2E, N]

    # Tiny field-embedding linear + per-node gather.
    field_embed = field_vector @ params["wf"] + params["bf"]         # [B, hidden]
    fe_nodes = field_embed[batch]                                    # [N, hidden]

    # Fused weight slab [hidden, 4*hidden] = Wq | Wk | Wv | Wo.
    w_slab = jnp.concatenate(
        [params["wq"], params["wk"], params["wv"], params["wo"]], axis=1)

    # Fused additive slab [N, 4*hidden] = bq | bk + fe | bv | bo.
    bias_row = jnp.concatenate(
        [params["bq"], params["bk"], params["bv"], params["bo"]])    # [4*hidden]
    addend = bias_row[None, :] + jnp.pad(fe_nodes, ((0, 0), (hidden, 2 * hidden)))

    # Block-diagonal head-sum matrix: sum_mat[h*D + d, h] = 1.
    sum_mat = jnp.repeat(jnp.eye(NUM_HEADS, dtype=jnp.float32), HEAD_DIM, axis=0)

    inputs = [x, w_slab, addend, oh_slab, sum_mat]
    vmem_spec = lambda: pl.BlockSpec(memory_space=pltpu.MemorySpace.VMEM)

    return pl.pallas_call(
        partial(physics_attention_kernel,
                hidden=hidden, head_dim=HEAD_DIM, n_edges=e),
        in_specs=[vmem_spec() for _ in inputs],
        out_specs=vmem_spec(),
        out_shape=jax.ShapeDtypeStruct((n, hidden), jnp.float32),
    )(*inputs)


def reference(x, params, edge_index, field_vector, batch):
    """Pure-JAX mirror of the PyTorch forward pass."""
    n = x.shape[0]
    src, dst = edge_index[0], edge_index[1]
    q = (x @ params["wq"] + params["bq"]).reshape(n, NUM_HEADS, HEAD_DIM)
    k = (x @ params["wk"] + params["bk"]).reshape(n, NUM_HEADS, HEAD_DIM)
    v = (x @ params["wv"] + params["bv"]).reshape(n, NUM_HEADS, HEAD_DIM)
    fe = (field_vector @ params["wf"] + params["bf"])[batch].reshape(n, NUM_HEADS, HEAD_DIM)
    k = k + fe
    scores = jnp.einsum("nhd,mhd->nhm", q, k) / np.sqrt(HEAD_DIM)
    edge_scores = scores[src, :, dst]                                # [E, H]
    edge_attn = jax.nn.softmax(edge_scores, axis=0)
    edge_values = v[dst]                                             # [E, H, D]
    attended = edge_attn[..., None] * edge_values
    out = jnp.zeros((n, NUM_HEADS, HEAD_DIM), jnp.float32).at[src].add(attended)
    out = out.reshape(n, HIDDEN) @ params["wo"] + params["bo"]
    return x + out


if __name__ == "__main__":
    key = jax.random.PRNGKey(0)
    keys = jax.random.split(key, 12)

    def linear_params(k, fan_in, fan_out):
        kw, kb = jax.random.split(k)
        bound = 1.0 / np.sqrt(fan_in)
        w = jax.random.uniform(kw, (fan_in, fan_out), jnp.float32, -bound, bound)
        bb = jax.random.uniform(kb, (fan_out,), jnp.float32, -bound, bound)
        return w, bb

    params = {}
    params["wq"], params["bq"] = linear_params(keys[0], HIDDEN, HIDDEN)
    params["wk"], params["bk"] = linear_params(keys[1], HIDDEN, HIDDEN)
    params["wv"], params["bv"] = linear_params(keys[2], HIDDEN, HIDDEN)
    params["wo"], params["bo"] = linear_params(keys[3], HIDDEN, HIDDEN)
    params["wf"], params["bf"] = linear_params(keys[4], 3, HIDDEN)

    x = jax.random.normal(keys[5], (N_NODES, HIDDEN), jnp.float32)
    field_vector = jax.random.normal(keys[6], (N_GRAPHS, 3), jnp.float32)
    src = jax.random.randint(keys[7], (N_EDGES,), 0, N_NODES)
    dst = jax.random.randint(keys[8], (N_EDGES,), 0, N_NODES)
    edge_index = jnp.stack([src, dst]).astype(jnp.int32)
    edge_attr = jax.random.normal(keys[9], (N_EDGES, 4), jnp.float32)  # unused in forward
    batch = jnp.concatenate([
        jnp.zeros(N_NODES // 2, jnp.int32),
        jnp.ones(N_NODES - N_NODES // 2, jnp.int32),
    ])

    out = physics_aware_attention(x, params, edge_index, edge_attr, field_vector, batch)
    out = jax.block_until_ready(out)

    ref = reference(x, params, edge_index, field_vector, batch)
    np.testing.assert_allclose(np.asarray(out), np.asarray(ref), rtol=1e-4, atol=1e-4)
    print("KERNEL_OK")
</pallas_src>

<mosaic_0001>
module attributes {stable_mosaic.version = 11 : i64} {
  func.func @physics_attention_kernel(%arg0: memref<16x32xf32, #tpu.memory_space<vmem>>, %arg1: memref<32x128xf32, #tpu.memory_space<vmem>>, %arg2: memref<16x128xf32, #tpu.memory_space<vmem>>, %arg3: memref<64x16xf32, #tpu.memory_space<vmem>>, %arg4: memref<32x8xf32, #tpu.memory_space<vmem>>, %arg5: memref<16x32xf32, #tpu.memory_space<vmem>>) attributes {dimension_semantics = [], scalar_prefetch = 0 : i64, scratch_operands = 0 : i64, tpu.core_type = #tpu.core_type<tc>} {
    %c0 = arith.constant 0 : index
    %c0_0 = arith.constant 0 : index
    %0 = vector.load %arg0[%c0, %c0_0] : memref<16x32xf32, #tpu.memory_space<vmem>>, vector<16x32xf32>
    %c0_1 = arith.constant 0 : index
    %c0_2 = arith.constant 0 : index
    %1 = vector.load %arg1[%c0_1, %c0_2] : memref<32x128xf32, #tpu.memory_space<vmem>>, vector<32x128xf32>
    %c0_3 = arith.constant 0 : index
    %c0_4 = arith.constant 0 : index
    %2 = vector.load %arg2[%c0_3, %c0_4] : memref<16x128xf32, #tpu.memory_space<vmem>>, vector<16x128xf32>
    %cst = arith.constant dense<0.000000e+00> : vector<16x128xf32>
    %3 = tpu.matmul %0, %1, %cst {dimension_numbers = #tpu.dot_dimension_numbers<[1], [0], [0], [1], [0, 0, 1, 1], [], []>} : vector<16x32xf32>, vector<32x128xf32>, vector<16x128xf32> -> vector<16x128xf32>
    %4 = arith.addf %3, %2 : vector<16x128xf32>
    %5 = vector.extract_strided_slice %4 {offsets = [0, 0], sizes = [16, 32], strides = [1, 1]} : vector<16x128xf32> to vector<16x32xf32>
    %6 = vector.extract_strided_slice %4 {offsets = [0, 32], sizes = [16, 64], strides = [1, 1]} : vector<16x128xf32> to vector<16x64xf32>
    %c0_5 = arith.constant 0 : index
    %c0_6 = arith.constant 0 : index
    %7 = vector.load %arg3[%c0_5, %c0_6] : memref<64x16xf32, #tpu.memory_space<vmem>>, vector<64x16xf32>
    %8 = vector.extract_strided_slice %7 {offsets = [0, 0], sizes = [32, 16], strides = [1, 1]} : vector<64x16xf32> to vector<32x16xf32>
    %9 = vector.extract_strided_slice %7 {offsets = [32, 0], sizes = [32, 16], strides = [1, 1]} : vector<64x16xf32> to vector<32x16xf32>
    %cst_7 = arith.constant dense<0.000000e+00> : vector<32x32xf32>
    %10 = tpu.matmul %8, %5, %cst_7 {dimension_numbers = #tpu.dot_dimension_numbers<[1], [0], [0], [1], [0, 0, 1, 1], [], []>} : vector<32x16xf32>, vector<16x32xf32>, vector<32x32xf32> -> vector<32x32xf32>
    %cst_8 = arith.constant dense<0.000000e+00> : vector<32x64xf32>
    %11 = tpu.matmul %9, %6, %cst_8 {dimension_numbers = #tpu.dot_dimension_numbers<[1], [0], [0], [1], [0, 0, 1, 1], [], []>} : vector<32x16xf32>, vector<16x64xf32>, vector<32x64xf32> -> vector<32x64xf32>
    %12 = vector.extract_strided_slice %11 {offsets = [0, 0], sizes = [32, 32], strides = [1, 1]} : vector<32x64xf32> to vector<32x32xf32>
    %13 = vector.extract_strided_slice %11 {offsets = [0, 32], sizes = [32, 32], strides = [1, 1]} : vector<32x64xf32> to vector<32x32xf32>
    %c0_9 = arith.constant 0 : index
    %c0_10 = arith.constant 0 : index
    %14 = vector.load %arg4[%c0_9, %c0_10] : memref<32x8xf32, #tpu.memory_space<vmem>>, vector<32x8xf32>
    %15 = arith.mulf %10, %12 : vector<32x32xf32>
    %cst_11 = arith.constant dense<0.000000e+00> : vector<32x8xf32>
    %16 = tpu.matmul %15, %14, %cst_11 {dimension_numbers = #tpu.dot_dimension_numbers<[1], [0], [0], [1], [0, 0, 1, 1], [], []>} : vector<32x32xf32>, vector<32x8xf32>, vector<32x8xf32> -> vector<32x8xf32>
    %cst_12 = arith.constant 5.000000e-01 : f32
    %17 = vector.broadcast %cst_12 : f32 to vector<32x8xf32>
    %18 = arith.mulf %16, %17 : vector<32x8xf32>
    %cst_13 = arith.constant dense<0xFF800000> : vector<8xf32>
    %19 = vector.multi_reduction <maximumf>, %18, %cst_13 [0] : vector<32x8xf32> to vector<8xf32>
    %20 = vector.shape_cast %19 : vector<8xf32> to vector<1x8xf32>
    %21 = vector.broadcast %20 : vector<1x8xf32> to vector<32x8xf32>
    %22 = arith.subf %18, %21 : vector<32x8xf32>
    %23 = math.exp %22 : vector<32x8xf32>
    %cst_14 = arith.constant dense<0.000000e+00> : vector<8xf32>
    %24 = vector.multi_reduction <add>, %23, %cst_14 [0] : vector<32x8xf32> to vector<8xf32>
    %25 = vector.shape_cast %24 : vector<8xf32> to vector<1x8xf32>
    %26 = tpu.reciprocal %25 : vector<1x8xf32> -> vector<1x8xf32>
    %27 = vector.broadcast %26 : vector<1x8xf32> to vector<32x8xf32>
    %28 = arith.mulf %23, %27 : vector<32x8xf32>
    %cst_15 = arith.constant dense<0.000000e+00> : vector<32x32xf32>
    %29 = tpu.matmul %28, %14, %cst_15 {dimension_numbers = #tpu.dot_dimension_numbers<[1], [1], [0], [0], [0, 0, 1, 0], [], []>} : vector<32x8xf32>, vector<32x8xf32>, vector<32x32xf32> -> vector<32x32xf32>
    %30 = arith.mulf %29, %13 : vector<32x32xf32>
    %cst_16 = arith.constant dense<0.000000e+00> : vector<16x32xf32>
    %31 = tpu.matmul %8, %30, %cst_16 {dimension_numbers = #tpu.dot_dimension_numbers<[0], [0], [1], [1], [0, 1, 1, 1], [], []>} : vector<32x16xf32>, vector<32x32xf32>, vector<16x32xf32> -> vector<16x32xf32>
    %32 = vector.extract_strided_slice %1 {offsets = [0, 96], sizes = [32, 32], strides = [1, 1]} : vector<32x128xf32> to vector<32x32xf32>
    %33 = vector.extract_strided_slice %2 {offsets = [0, 96], sizes = [1, 32], strides = [1, 1]} : vector<16x128xf32> to vector<1x32xf32>
    %cst_17 = arith.constant dense<0.000000e+00> : vector<16x32xf32>
    %34 = tpu.matmul %31, %32, %cst_17 {dimension_numbers = #tpu.dot_dimension_numbers<[1], [0], [0], [1], [0, 0, 1, 1], [], []>} : vector<16x32xf32>, vector<32x32xf32>, vector<16x32xf32> -> vector<16x32xf32>
    %35 = vector.broadcast %33 : vector<1x32xf32> to vector<16x32xf32>
    %36 = arith.addf %34, %35 : vector<16x32xf32>
    %37 = arith.addf %0, %36 : vector<16x32xf32>
    %c0_18 = arith.constant 0 : index
    %c0_19 = arith.constant 0 : index
    %38 = vector.load %arg5[%c0_18, %c0_19] : memref<16x32xf32, #tpu.memory_space<vmem>>, vector<16x32xf32>
    tpu.vector_store %arg5[%c0_18, %c0_19], %37 {strides = array<i32>} : memref<16x32xf32, #tpu.memory_space<vmem>>, vector<16x32xf32>,
    return
  }
}

</mosaic_0001>

<bundles_post_ra>
// kernel: tpu_custom_call.1
= control target key start
LH: loop header
LB: loop body
LE: loop exit
PB: predicated region body
PF: predicated region fallthrough
CT: control target
= control target key end

     0   :  { %s730_s0 = inlined_call_operand.vmem [shape: f32[16,32], index: 0, kind: input, shape index: {}]   ;;  %s731_s1 = inlined_call_operand.vmem [shape: f32[32,128], index: 1, kind: input, shape index: {}]   ;;  %s732_s2 = inlined_call_operand.vmem [shape: f32[16,128], index: 2, kind: input, shape index: {}]   ;;  %s733_s3 = inlined_call_operand.vmem [shape: f32[64,16], index: 3, kind: input, shape index: {}]   ;;  %s734_s4 = inlined_call_operand.vmem [shape: f32[32,8], index: 4, kind: input, shape index: {}]   ;;  %s735_s5 = inlined_call_operand.hbm [shape: f32[16,32], index: 5, kind: output, shape index: {}]  }
   0x1   :  { %v595_v0 = vld [vmem:[%s731_s1 + $0x18] sm:$0xff]  ;;  %v600_v1 = vld [vmem:[%s731_s1 + $0x10] sm:$0xff]  ;;  %v608_v3 = vld [vmem:[%s731_s1 + $0x8] sm:$0xff] }
   0x2   :  { %48 = vmatpush.msra.mxu0 %v595_v0  ;;  %v511_v2 = vpack.i.bf16 %v600_v1, %v595_v0  ;;  %v613_v4 = vld [vmem:[%s731_s1] sm:$0xff] }
   0x3   :  { %v516_v5 = vpack.i.bf16 %v613_v4, %v608_v3 }
   0x4   :  { %10 = vsyncpa [#allocation3], 0  ;;  %49 = vmatpush.msra.mxu0 %v600_v1  ;;  %v622_v6 = vld [vmem:[%s730_s0] sm:$0xff]  ;;  %vm29_vm0 = vcmask 261120   ;;  %v630_v7 = vld [vmem:[%s730_s0 + $0x8] sm:$0xff]  ;;  %s557_s0 = smov 96  }
   0x5   :  { %v637_v9 = vld [vmem:[%s732_s2] sm:$0xff]  ;;  %v28_v10 = vld [vmem:[%s732_s2 + $0x8] sm:$0xff]  ;;  %vm67_vm1 = vcmask 130048   ;;  %v61_v17 = vld [vmem:[%s733_s3 + $0x10] sm:$0xff]  ;;  %vm211_vm2 = vcmask 64512   ;;  %s560_s8 = smov 128  }
   0x6   :  { %50 = vmatpush.msra.mxu0 %v608_v3  ;;  %v59_v15 = vld [vmem:[%s733_s3] sm:$0xff]  ;;  %v60_v16 = vld [vmem:[%s733_s3 + $0x8] sm:$0xff]  ;;  %v62_v18 = vld [vmem:[%s733_s3 + $0x18] sm:$0xff]  ;;  %s561_s9 = smov 8  }
   0x7   :  { %v161_v19 = vld [vmem:[%s734_s4 + $0x18] sm:$0xff]  ;;  %v160_v20 = vld [vmem:[%s734_s4 + $0x10] sm:$0xff]  ;;  %v63_v24 = vld [vmem:[%s733_s3 + $0x20] sm:$0xff] }
   0x8   :  { %51 = vmatpush.msra.mxu0 %v613_v4  ;;  %190 = vmatpush.msra.mxu3 %v161_v19  ;;  %v64_v25 = vld [vmem:[%s733_s3 + $0x28] sm:$0xff]  ;;  %v65_v26 = vld [vmem:[%s733_s3 + $0x30] sm:$0xff]  ;;  %v66_v27 = vld [vmem:[%s733_s3 + $0x38] sm:$0xff]  ;;  %s558_s3 = smov 32  }
   0x9   :  { %474 = vmatmul.msk.f32.vlgmr.msra.gmra.mxu0 %vm29_vm0, %v622_v6  ;;  %v159_v28 = vld [vmem:[%s734_s4 + $0x8] sm:$0xff]  ;;  %v158_v29 = vld [vmem:[%s734_s4] sm:$0xff]  ;;  %s559_s4 = smov [#allocation2]  }
   0xa   :  { %191 = vmatpush.msra.mxu3 %v160_v20  ;;  %488 = vmatpush.xpose.msk.msrb.mxu0 %vm211_vm2, %v161_v19  ;;  %s460_s30 = sshll.u32 %s559_s4, 4  ;;  %s461_s30 = int_to_ptr.vmem [resolvable:$true] %s460_s30 }
   0xc   :  { %192 = vmatpush.msra.mxu3 %v159_v28 }
   0xe   :  { %193 = vmatpush.msra.mxu3 %v158_v29  ;;  %489 = vmatpush.xpose.msk.msrb.mxu0 %vm211_vm2, %v160_v20 }
  0x11   :  { %475 = vmatmul.msk.f32.gmra.mxu0 %vm29_vm0, %v630_v7 }
  0x12   :  { %490 = vmatpush.xpose.msk.msrb.mxu0 %vm211_vm2, %v159_v28 }
  0x16   :  { %491 = vmatpush.xpose.msk.msrb.mxu0 %vm211_vm2, %v158_v29 }
  0x86   :  { %v53_v8 = vpop.f32.mrf.mxu0 }
  0x87   :  { %v54_v12 = vadd.f32 %v53_v8, %v637_v9 }
  0x8e   :  { %v56_v11 = vpop.f32.mrf.mxu0 }
  0x8f   :  { %v57_v13 = vadd.f32 %v56_v11, %v28_v10 }
  0x91   :  { %94 = vmatpush.msra.mxu1 %v57_v13  ;;  %v506_v14 = vpack.i.bf16 %v54_v12, %v57_v13 }
  0x93   :  { %507 = vrot.lane.b32.xlu0 %v506_v14, %s557_s0  ;;  %95 = vmatpush.msra.mxu1 %v54_v12 }
  0x94   :  { %476 = vmatmul.msk.f32.vlgmr.msra.gmra.mxu1 %vm67_vm1, %v59_v15 }
  0x9c   :  { %477 = vmatmul.msk.f32.gmra.mxu1 %vm67_vm1, %v60_v16 }
  0xa4   :  { %478 = vmatmul.msk.f32.gmra.mxu1 %vm67_vm1, %v61_v17 }
  0xac   :  { %479 = vmatmul.msk.f32.gmra.mxu1 %vm67_vm1, %v62_v18 }
 0x105   :  { %v508_v21 = vpop.permute.xlu0 %507 }
 0x106   :  { %v509_v22 = vunpack.i.l.bf16 %v508_v21  ;;  %v510_v23 = vunpack.i.h.bf16 %v508_v21 }
 0x108   :  { %143 = vmatpush.msra.mxu2 %v509_v22 }
 0x10a   :  { %144 = vmatpush.msra.mxu2 %v510_v23 }
 0x10b   :  { %480 = vmatmul.msk.f32.vlgmr.msra.gmra.mxu2 %vm67_vm1, %v63_v24 }
 0x111   :  { %v97_v30 = vpop.f32.mrf.mxu1 }
 0x113   :  { %481 = vmatmul.msk.f32.gmra.mxu2 %vm67_vm1, %v64_v25 }
 0x119   :  { %v100_v33 = vpop.f32.mrf.mxu1 }
 0x11b   :  { %482 = vmatmul.msk.f32.gmra.mxu2 %vm67_vm1, %v65_v26 }
 0x121   :  { %v103_v36 = vpop.f32.mrf.mxu1 }
 0x123   :  { %483 = vmatmul.msk.f32.gmra.mxu2 %vm67_vm1, %v66_v27 }
 0x129   :  { %v106_v39 = vpop.f32.mrf.mxu1 }
 0x18e   :  { %v146_v31 = vpop.f32.mrf.mxu2 }
 0x18f   :  { %v162_v32 = vmul.f32 %v146_v31, %v97_v30  ;;  %325 = vrot.lane.b32.xlu2 %v146_v31, %s557_s0 }
 0x191   :  { %484 = vmatmul.msk.f32.vlgmr.msra.gmra.mxu3 %vm29_vm0, %v162_v32 }
 0x196   :  { %v149_v34 = vpop.f32.mrf.mxu2 }
 0x197   :  { %v163_v35 = vmul.f32 %v149_v34, %v100_v33 }
 0x199   :  { %485 = vmatmul.msk.f32.gmra.mxu3 %vm29_vm0, %v163_v35 }
 0x19e   :  { %v152_v37 = vpop.f32.mrf.mxu2 }
 0x19f   :  { %v164_v38 = vmul.f32 %v152_v37, %v103_v36  ;;  %329 = vrot.lane.b32.xlu1 %v152_v37, %s557_s0 }
 0x1a1   :  { %486 = vmatmul.msk.f32.gmra.mxu3 %vm29_vm0, %v164_v38 }
 0x1a6   :  { %v155_v40 = vpop.f32.mrf.mxu2 }
 0x1a7   :  { %v165_v41 = vmul.f32 %v155_v40, %v106_v39  ;;  %327 = vrot.lane.b32.xlu1 %v149_v34, %s557_s0  ;;  %331 = vrot.lane.b32.xlu0 %v155_v40, %s557_s0  ;;  %s462_s0 = sshll.u32 %s735_s5, 4  ;;  %s463_s0 = int_to_ptr.hbm [resolvable:$true] %s462_s0 }
 0x1a9   :  { %487 = vmatmul.msk.f32.gmra.mxu3 %vm29_vm0, %v165_v41 }
 0x1af   :  { %512 = vrot.lane.b32.xlu0 %v511_v2, %s558_s3  ;;  %517 = vrot.lane.b32.xlu1 %v516_v5, %s558_s3 }
 0x1b5   :  { %341 = vxpose.xlu2.b32.start [1/4] (short) (narrow) %v59_v15, 16 }
 0x1bd   :  { %342 = vxpose.xlu2.b32.cont [2/4] (short) (narrow) %v60_v16, 16 }
 0x1c5   :  { %343 = vxpose.xlu2.b32.cont [3/4] (short) (narrow) %v61_v17, 16 }
 0x1cd   :  { %344 = vxpose.xlu2.b32.end [4/4] (short) (narrow) %v62_v18, 16 }
 0x214   :  { %v195_v42 = vpop.f32.mrf.mxu3 }
 0x215   :  { %v207_v46 = vmul.f32 0.5, %v195_v42 }
 0x217   :  { %v212_v51 = vsel %vm211_vm2, %v207_v46, -inf }
 0x21c   :  { %v198_v43 = vpop.f32.mrf.mxu3 }
 0x21d   :  { %v208_v45 = vmul.f32 0.5, %v198_v43 }
 0x21f   :  { %v213_v49 = vsel %vm211_vm2, %v208_v45, -inf }
 0x220   :  { %v216_v54 = vmax.f32 %v212_v51, %v213_v49  ;;  %v330_v49 = vpop.permute.xlu1 %329 }
 0x224   :  { %v201_v44 = vpop.f32.mrf.mxu3 }
 0x225   :  { %v209_v47 = vmul.f32 0.5, %v201_v44 }
 0x227   :  { %v214_v52 = vsel %vm211_vm2, %v209_v47, -inf }
 0x228   :  { %v328_v51 = vpop.permute.xlu1 %327 }
 0x22c   :  { %v204_v48 = vpop.f32.mrf.mxu3 }
 0x22d   :  { %v210_v50 = vmul.f32 0.5, %v204_v48 }
 0x22f   :  { %v215_v53 = vsel %vm211_vm2, %v210_v50, -inf }
 0x230   :  { %v217_v55 = vmax.f32 %v214_v52, %v215_v53  ;;  %v332_v52 = vpop.permute.xlu0 %331 }
 0x232   :  { %v218_v56 = vmax.f32 %v216_v54, %v217_v55  ;;  %v518_v55 = vpop.permute.xlu1 %517 }
 0x233   :  { %v519_v0 = vunpack.i.l.bf16 %v518_v55  ;;  %v520_v3 = vunpack.i.h.bf16 %v518_v55 }
 0x234   :  { %v219_v57 = vrot.slane %v218_v56, 4 }
 0x236   :  { %v220_v58 = vmax.f32 %v218_v56, %v219_v57  ;;  %v326_v56 = vpop.permute.xlu2 %325 }
 0x238   :  { %v221_v59 = vrot.slane %v220_v58, 2  ;;  %v513_v54 = vpop.permute.xlu0 %512 }
 0x239   :  { %v514_v57 = vunpack.i.l.bf16 %v513_v54 }
 0x23a   :  { %v222_v60 = vmax.f32 %v220_v58, %v221_v59  ;;  %v515_v58 = vunpack.i.h.bf16 %v513_v54 }
 0x23b   :  { %441 = vmatpush.msrb.mxu2 %v514_v57 }
 0x23c   :  { %v223_v61 = vrot.slane %v222_v60, 1 }
 0x23d   :  { %442 = vmatpush.msrb.mxu2 %v515_v58 }
 0x23e   :  { %v224_v62 = vmax.f32 %v222_v60, %v223_v61 }
 0x23f   :  { %443 = vmatpush.msrb.mxu2 %v519_v0 }
 0x240   :  { %v225_v63 = vsub.f32 %v207_v46, %v224_v62  ;;  %v226_v8 = vsub.f32 %v208_v45, %v224_v62  ;;  %v227_v10 = vsub.f32 %v209_v47, %v224_v62  ;;  %v228_v11 = vsub.f32 %v210_v50, %v224_v62 }
 0x241   :  { %v402_v47 = vperm.slane %v637_v9, 0  ;;  %444 = vmatpush.msrb.mxu2 %v520_v3 }
 0x242   :  { %v229_v12 = vmul.f32 1.442695, %v225_v63  ;;  %v231_v13 = vmul.f32 1.442695, %v226_v8  ;;  %v233_v14 = vmul.f32 1.442695, %v227_v10 }
 0x243   :  { %v235_v15 = vmul.f32 1.442695, %v228_v11  ;;  %420 = vrot.lane.b32.xlu0 %v402_v47, %s558_s3 }
 0x244   :  { %521 = vpow2.f32 %v229_v12 }
 0x245   :  { %523 = vpow2.f32 %v231_v13 }
 0x246   :  { %525 = vpow2.f32 %v233_v14 }
 0x247   :  { %527 = vpow2.f32 %v235_v15 }
 0x24a   :  { %v522_v16 = vpop.eup %521 }
 0x24b   :  { %v524_v17 = vpop.eup %523  ;;  %v237_v18 = vsel %vm211_vm2, %v522_v16, 0.0 }
 0x24c   :  { %v526_v19 = vpop.eup %525  ;;  %v238_v20 = vsel %vm211_vm2, %v524_v17, 0.0 }
 0x24d   :  { %v528_v21 = vpop.eup %527  ;;  %v239_v22 = vadd.f32 %v238_v20, %v237_v18  ;;  %v240_v23 = vsel %vm211_vm2, %v526_v19, 0.0 }
 0x24e   :  { %v242_v25 = vsel %vm211_vm2, %v528_v21, 0.0  ;;  %v357_v9 = vpop.trf.xlu2 }
 0x24f   :  { %v241_v24 = vadd.f32 %v240_v23, %v239_v22 }
 0x251   :  { %v243_v26 = vadd.f32 %v242_v25, %v241_v24 }
 0x253   :  { %v244_v27 = vrot.slane %v243_v26, 4 }
 0x255   :  { %v245_v28 = vadd.f32 %v244_v27, %v243_v26 }
 0x256   :  { %v358_v60 = vpop.trf.xlu2 }
 0x257   :  { %v246_v29 = vrot.slane %v245_v28, 2 }
 0x259   :  { %v247_v30 = vadd.f32 %v246_v29, %v245_v28 }
 0x25b   :  { %v248_v31 = vrot.slane %v247_v30, 1 }
 0x25d   :  { %v249_v32 = vadd.f32 %v248_v31, %v247_v30 }
 0x25f   :  { %529 = vrcp.f32 %v249_v32  ;;  %v261_v36 = vand.u32 2147483648, %v249_v32  ;;  %v259_v38 = vand.u32 2147483647, %v249_v32  ;;  %vm255_vm4 = vweird.f32 %v249_v32 }
 0x261   :  { %v262_v40 = vor.u32 1.1754944e-38, %v261_v36  ;;  %vm260_vm6 = vcmp.eq.f32.partialorder %v259_v38, 8.507059e+37 }
 0x265   :  { %v530_v33 = vpop.eup %529 }
 0x266   :  { %v251_v34 = vmul.f32 %v530_v33, %v249_v32  ;;  %vm256_vm3 = vweird.f32 %v530_v33 }
 0x267   :  { %vm257_vm5 = vmor %vm255_vm4, %vm256_vm3 }
 0x268   :  { %v252_v35 = vsub.f32 1.0, %v251_v34 }
 0x26a   :  { %v253_v37 = vmul.f32 %v530_v33, %v252_v35 }
 0x26c   :  { %v254_v39 = vadd.f32 %v530_v33, %v253_v37 }
 0x26e   :  { %v258_v41 = vsel %vm257_vm5, %v530_v33, %v254_v39 }
 0x26f   :  { %v263_v42 = vsel %vm260_vm6, %v262_v40, %v258_v41 }
 0x270   :  { %v264_v43 = vmul.f32 %v522_v16, %v263_v42  ;;  %v265_v44 = vmul.f32 %v524_v17, %v263_v42  ;;  %v266_v45 = vmul.f32 %v526_v19, %v263_v42  ;;  %v267_v46 = vmul.f32 %v528_v21, %v263_v42 }
 0x272   :  { %492 = vmatmul.msk.f32.vlgmr.msrb.gmra.mxu0 %vm211_vm2, %v264_v43 }
 0x27a   :  { %493 = vmatmul.msk.f32.gmra.mxu0 %vm211_vm2, %v265_v44 }
 0x282   :  { %494 = vmatmul.msk.f32.gmra.mxu0 %vm211_vm2, %v266_v45 }
 0x28a   :  { %495 = vmatmul.msk.f32.gmra.mxu0 %vm211_vm2, %v267_v46 }
 0x2b5   :  { %v421_v63 = vpop.permute.xlu0 %420 }
 0x2ef   :  { %v309_v48 = vpop.f32.mrf.mxu0 }
 0x2f0   :  { %v337_v59 = vmul.f32 %v326_v56, %v309_v48 }
 0x2f7   :  { %v312_v50 = vpop.f32.mrf.mxu0 }
 0x2f8   :  { %v338_v5 = vmul.f32 %v328_v51, %v312_v50 }
 0x2ff   :  { %v315_v53 = vpop.f32.mrf.mxu0 }
 0x300   :  { %v339_v4 = vmul.f32 %v330_v49, %v315_v53 }
 0x307   :  { %v318_v1 = vpop.f32.mrf.mxu0 }
 0x308   :  { %v340_v2 = vmul.f32 %v332_v52, %v318_v1 }
 0x30a   :  { %391 = vmatpush.msrb.mxu1 %v340_v2 }
 0x30c   :  { %392 = vmatpush.msrb.mxu1 %v339_v4 }
 0x30e   :  { %393 = vmatpush.msrb.mxu1 %v338_v5 }
 0x310   :  { %394 = vmatpush.msrb.mxu1 %v337_v59 }
 0x311   :  { %496 = vmatmul.msk.f32.vlgmr.msrb.gmra.mxu1 %vm29_vm0, %v357_v9 }
 0x319   :  { %497 = vmatmul.msk.f32.gmra.mxu1 %vm29_vm0, %v358_v60 }
 0x38e   :  { %v396_v61 = vpop.f32.mrf.mxu1 }
 0x38f   :  { %498 = vmatmul.msk.f32.vlgmr.msrb.gmra.mxu2 %vm29_vm0, %v396_v61 }
 0x396   :  { %v399_v62 = vpop.f32.mrf.mxu1 }
 0x397   :  { %499 = vmatmul.msk.f32.gmra.mxu2 %vm29_vm0, %v399_v62 }
 0x412   :  { %v446_v8 = vpop.f32.mrf.mxu2 }
 0x413   :  { %v447_v10 = vadd.f32 %v446_v8, %v421_v63 }
 0x415   :  { %v452_v11 = vadd.f32 %v447_v10, %v622_v6 }
 0x417   :  { %454 = vst.msk [vmem:[#allocation2] sm:$0xff] %vm29_vm0, %v452_v11 }
 0x41a   :  { %v449_v12 = vpop.f32.mrf.mxu2 }
 0x41b   :  { %v450_v13 = vadd.f32 %v449_v12, %v421_v63 }
 0x41d   :  { %v453_v14 = vadd.f32 %v450_v13, %v630_v7 }
 0x41f   :  { %455 = vst.msk [vmem:[#allocation2 + $0x8] sm:$0xff] %vm29_vm0, %v453_v14 }
 0x420   :  { %468 = dma.vmem_to_hbm [thread:$0]  %s461_s30, 256, %s463_s0, [#allocation3], %s560_s8, %s560_s8, %s561_s9  }
 0x421   :  { %555 = dma.done.wait [#allocation3], 256  }
 0x422   :  { %556 = vsyncadd [#allocation3], 4294967040 }
 0x423   :  { %473 = vsyncpa [#allocation3], 1 }

</bundles_post_ra>
